<compile_context>
chip_gen: v7x
topology: tpu7x:2x2x1
jax: 0.10.0
libtpu: 0.0.40
codegen_flags: <defaults>
</compile_context>

<pallas_src>
import math
from functools import partial

import jax
import jax.numpy as jnp
from jax import lax
from jax.experimental import pallas as pl
from jax.experimental.pallas import tpu as pltpu


def _round_up(x, m):
    return (x + m - 1) // m * m


def emb_pos_ln_kernel(ids_ref, table_ref, pe_ref, gamma_ref, beta_ref,
                      out_ref, *, emb_size, eps):
    """One row-tile: embedding gather (one-hot MXU) + PE add + LayerNorm."""
    tm, e_pad = out_ref.shape
    vocab = table_ref.shape[0]

    # ---- embedding lookup via one-hot matmul (MXU gather) -------------------
    # bf16 one-hot x bf16 table, f32 accumulation: exact at table (bf16)
    # precision because each one-hot row selects exactly one table row.
    # TODO(synk): for large vocabularies (>~2K) switch to a scalar-prefetch /
    # manual-DMA row gather with the table left in HBM (memory_space=pl.ANY)
    # instead of a VMEM-resident table + O(tm*V) one-hot.
    ids = ids_ref[...]                                               # (tm, 1) i32
    onehot = (ids == lax.broadcasted_iota(jnp.int32, (tm, vocab), 1)
              ).astype(jnp.bfloat16)
    words = jnp.dot(onehot, table_ref[...],
                    preferred_element_type=jnp.float32)              # (tm, Ep) f32

    # ---- add VMEM-resident sinusoidal positional-encoding block -------------
    x = words + pe_ref[...]

    # ---- LayerNorm over the real emb_size lanes (padded lanes are zero) -----
    inv_e = 1.0 / emb_size
    mean = jnp.sum(x, axis=-1, keepdims=True) * inv_e      # zeros don't bias sum
    centered = x - mean
    ss_all = jnp.sum(centered * centered, axis=-1, keepdims=True)
    # padded lanes contribute (e_pad - emb_size) * mean^2 to ss_all; remove it
    var = (ss_all - (e_pad - emb_size) * (mean * mean)) * inv_e
    var = jnp.maximum(var, 0.0)                            # guard f32 cancellation
    inv = lax.rsqrt(var + eps)
    # padded lanes come out exactly 0 because gamma/beta are zero-padded
    out_ref[...] = (centered * inv * gamma_ref[...] + beta_ref[...]
                    ).astype(out_ref.dtype)
    # TODO(synk): nn.Dropout(0.1) treated as identity (inference / eval mode).


def build_embeddings_add_position(table, gamma, beta, seq_len, *,
                                  tm=512, eps=1e-5, out_dtype=jnp.float32):
    """One-time constant prep; returns a jitted fn: ids (B, S) -> (B, S, E)."""
    V, E = table.shape
    S = int(seq_len)

    e_pad = _round_up(E, 128)                   # lane-dense last dim
    v_pad = _round_up(V, 8)                     # sublane-aligned table rows
    # Row tiles are a multiple of `base` so the PE pattern is identical in
    # every tile and a single PE block can stay VMEM-resident across the grid.
    base = S * 8 // math.gcd(S, 8)

    # ---- hoisted constants (computed once, reused by every call) ------------
    table_p = jnp.pad(table.astype(jnp.bfloat16),
                      ((0, v_pad - V), (0, e_pad - E)))
    gamma_p = jnp.pad(gamma.astype(jnp.float32), (0, e_pad - E)).reshape(1, e_pad)
    beta_p = jnp.pad(beta.astype(jnp.float32), (0, e_pad - E)).reshape(1, e_pad)

    pos = (jnp.arange(base, dtype=jnp.int32) % S).astype(jnp.float32)[:, None]
    div = jnp.exp(jnp.arange(0.0, E, 2.0, dtype=jnp.float32)
                  * (-math.log(10000.0) / E))
    ang = pos * div                                                  # (base, E//2)
    pe_base = jnp.zeros((base, e_pad), jnp.float32)
    pe_base = pe_base.at[:, 0:E:2].set(jnp.sin(ang))
    pe_base = pe_base.at[:, 1:E:2].set(jnp.cos(ang))

    try:
        vmem_cap = int(pltpu.get_tpu_info().vmem_capacity_bytes)
    except Exception:
        vmem_cap = 64 << 20                     # conservative (v7x) fallback

    kernel = partial(emb_pos_ln_kernel, emb_size=E, eps=eps)
    out_bytes = jnp.dtype(out_dtype).itemsize

    @jax.jit
    def apply(ids):
        B, s_in = ids.shape
        assert s_in == S, "sequence length must match the built PE pattern"
        N = B * S

        # row tile: multiple of base; keep >=2 grid steps when possible (v7x
        # has 2 TensorCores and dimension_semantics=("parallel",) shards them).
        rows_needed = _round_up(N, base)
        half_rows = _round_up((N + 1) // 2, base)
        tm_cap = max(base, min(rows_needed, half_rows))
        tm_eff = min(max(base, (tm // base) * base), tm_cap)
        n_pad = _round_up(N, tm_eff)

        # flatten + pad ids (pad rows use id 0; their output is discarded)
        ids_flat = jnp.zeros((n_pad,), jnp.int32).at[:N].set(
            ids.reshape(N).astype(jnp.int32)).reshape(n_pad, 1)
        # PE block covering one tile (tiny; DMA'd once, resident across grid)
        pe_block = jnp.tile(pe_base, (tm_eff // base, 1))

        # VMEM budget from the actual working set (worst-case double-buffered).
        # TODO(synk): constant-index blocks (table/PE/gamma/beta) could be
        # single-buffered via pipeline_mode=pl.Buffered(1) to halve their cost.
        needed = (2 * v_pad * e_pad * 2              # bf16 table
                  + 2 * tm_eff * e_pad * 4           # PE block
                  + 2 * tm_eff * e_pad * out_bytes   # output tiles
                  + 2 * tm_eff * 4                   # ids tiles
                  + 2 * 2 * e_pad * 4)               # gamma + beta
        vmem_limit = int(min(max(needed + (4 << 20), 32 << 20),
                             int(vmem_cap * 0.9)))

        out = pl.pallas_call(
            kernel,
            out_shape=jax.ShapeDtypeStruct((n_pad, e_pad), out_dtype),
            grid=(n_pad // tm_eff,),
            in_specs=[
                pl.BlockSpec((tm_eff, 1), lambda i: (i, 0)),      # ids tile
                pl.BlockSpec((v_pad, e_pad), lambda i: (0, 0)),   # table (resident)
                pl.BlockSpec((tm_eff, e_pad), lambda i: (0, 0)),  # PE (resident)
                pl.BlockSpec((1, e_pad), lambda i: (0, 0)),       # LayerNorm gamma
                pl.BlockSpec((1, e_pad), lambda i: (0, 0)),       # LayerNorm beta
            ],
            out_specs=pl.BlockSpec((tm_eff, e_pad), lambda i: (i, 0)),
            compiler_params=pltpu.CompilerParams(
                dimension_semantics=("parallel",),
                vmem_limit_bytes=vmem_limit),
        )(ids_flat, table_p, pe_block, gamma_p, beta_p)

        return out[:N, :E].reshape(B, S, E)

    return apply


def _reference(ids, table, gamma, beta):
    B, S = ids.shape
    _, E = table.shape
    words = table[ids]                                              # (B, S, E)
    pos = jnp.arange(S, dtype=jnp.float32)[None, :, None]           # (1, S, 1)
    div = jnp.exp(jnp.arange(0.0, E, 2.0) * (-math.log(10000.0) / E))
    pe = jnp.zeros((B, S, E), jnp.float32)
    pe = pe.at[..., 0::2].set(jnp.sin(pos * div))
    pe = pe.at[..., 1::2].set(jnp.cos(pos * div))
    x = words + pe
    mean = jnp.mean(x, axis=-1, keepdims=True)
    var = jnp.mean((x - mean) ** 2, axis=-1, keepdims=True)
    return (x - mean) / jnp.sqrt(var + 1e-5) * gamma + beta


if __name__ == "__main__":
    vocab_size, emb_size = 64, 32
    B, S = 2, 8

    key = jax.random.PRNGKey(0)
    k_ids, k_tab = jax.random.split(key, 2)

    ids = jax.random.randint(k_ids, (B, S), 0, vocab_size, dtype=jnp.int32)
    table = jax.random.normal(k_tab, (vocab_size, emb_size), dtype=jnp.float32)
    # nn.LayerNorm default init: weight = 1, bias = 0 (deterministic)
    gamma = jnp.ones((emb_size,), jnp.float32)
    beta = jnp.zeros((emb_size,), jnp.float32)

    embed = build_embeddings_add_position(table, gamma, beta, S)
    out = jax.block_until_ready(embed(ids))

    # The kernel stores the embedding table in bf16; compare against a
    # reference that rounds the table identically so the lookup matches.
    table_bf = table.astype(jnp.bfloat16).astype(jnp.float32)
    ref = _reference(ids, table_bf, gamma, beta)
    assert out.shape == (B, S, emb_size)
    assert jnp.allclose(out, ref, atol=1e-4, rtol=1e-4), "mismatch vs reference"

    print("KERNEL_OK")
</pallas_src>

<mosaic_0001>
module attributes {stable_mosaic.version = 11 : i64} {
  func.func @emb_pos_ln_kernel(%arg0: i32, %arg1: memref<8x1xi32, #tpu.memory_space<vmem>>, %arg2: memref<64x128xbf16, #tpu.memory_space<vmem>>, %arg3: memref<8x128xf32, #tpu.memory_space<vmem>>, %arg4: memref<1x128xf32, #tpu.memory_space<vmem>>, %arg5: memref<1x128xf32, #tpu.memory_space<vmem>>, %arg6: memref<8x128xf32, #tpu.memory_space<vmem>>) attributes {dimension_semantics = [#tpu.dimension_semantics<parallel>], iteration_bounds = array<i64: 2>, scalar_prefetch = 0 : i64, scratch_operands = 0 : i64, tpu.core_type = #tpu.core_type<tc>, window_params = [{transform_indices = @transform_0, window_bounds = array<i64: 8, 1>}, {pipeline_mode = #tpu.pipeline_mode<synchronous>, transform_indices = @transform_1, window_bounds = array<i64: 64, 128>}, {pipeline_mode = #tpu.pipeline_mode<synchronous>, transform_indices = @transform_2, window_bounds = array<i64: 8, 128>}, {pipeline_mode = #tpu.pipeline_mode<synchronous>, transform_indices = @transform_3, window_bounds = array<i64: 1, 128>}, {pipeline_mode = #tpu.pipeline_mode<synchronous>, transform_indices = @transform_4, window_bounds = array<i64: 1, 128>}, {transform_indices = @transform_5, window_bounds = array<i64: 8, 128>}]} {
    %c0 = arith.constant 0 : index
    %c0_0 = arith.constant 0 : index
    %0 = vector.load %arg1[%c0, %c0_0] : memref<8x1xi32, #tpu.memory_space<vmem>>, vector<8x1xi32>
    %1 = tpu.iota {dimensions = array<i32: 1>} : vector<8x64xi32>
    %2 = vector.broadcast %0 : vector<8x1xi32> to vector<8x64xi32>
    %3 = arith.cmpi eq, %2, %1 : vector<8x64xi32>
    %4 = arith.extui %3 : vector<8x64xi1> to vector<8x64xi32>
    %5 = arith.sitofp %4 : vector<8x64xi32> to vector<8x64xf32>
    %6 = arith.truncf %5 : vector<8x64xf32> to vector<8x64xbf16>
    %c0_1 = arith.constant 0 : index
    %c0_2 = arith.constant 0 : index
    %7 = vector.load %arg2[%c0_1, %c0_2] : memref<64x128xbf16, #tpu.memory_space<vmem>>, vector<64x128xbf16>
    %cst = arith.constant dense<0.000000e+00> : vector<8x128xf32>
    %8 = tpu.matmul %6, %7, %cst {dimension_numbers = #tpu.dot_dimension_numbers<[1], [0], [0], [1], [0, 0, 1, 1], [], []>} : vector<8x64xbf16>, vector<64x128xbf16>, vector<8x128xf32> -> vector<8x128xf32>
    %c0_3 = arith.constant 0 : index
    %c0_4 = arith.constant 0 : index
    %9 = vector.load %arg3[%c0_3, %c0_4] : memref<8x128xf32, #tpu.memory_space<vmem>>, vector<8x128xf32>
    %10 = arith.addf %8, %9 : vector<8x128xf32>
    %cst_5 = arith.constant dense<0.000000e+00> : vector<8xf32>
    %11 = vector.multi_reduction <add>, %10, %cst_5 [1] : vector<8x128xf32> to vector<8xf32>
    %12 = vector.shape_cast %11 : vector<8xf32> to vector<8x1xf32>
    %cst_6 = arith.constant 3.125000e-02 : f32
    %13 = vector.broadcast %cst_6 : f32 to vector<8x1xf32>
    %14 = arith.mulf %12, %13 : vector<8x1xf32>
    %15 = vector.broadcast %14 : vector<8x1xf32> to vector<8x128xf32>
    %16 = arith.subf %10, %15 : vector<8x128xf32>
    %17 = arith.mulf %16, %16 : vector<8x128xf32>
    %cst_7 = arith.constant dense<0.000000e+00> : vector<8xf32>
    %18 = vector.multi_reduction <add>, %17, %cst_7 [1] : vector<8x128xf32> to vector<8xf32>
    %19 = vector.shape_cast %18 : vector<8xf32> to vector<8x1xf32>
    %20 = arith.mulf %14, %14 : vector<8x1xf32>
    %cst_8 = arith.constant 9.600000e+01 : f32
    %21 = vector.broadcast %cst_8 : f32 to vector<8x1xf32>
    %22 = arith.mulf %21, %20 : vector<8x1xf32>
    %23 = arith.subf %19, %22 : vector<8x1xf32>
    %cst_9 = arith.constant 3.125000e-02 : f32
    %24 = vector.broadcast %cst_9 : f32 to vector<8x1xf32>
    %25 = arith.mulf %23, %24 : vector<8x1xf32>
    %cst_10 = arith.constant 0.000000e+00 : f32
    %26 = vector.broadcast %cst_10 : f32 to vector<8x1xf32>
    %27 = arith.maximumf %25, %26 : vector<8x1xf32>
    %cst_11 = arith.constant 9.99999974E-6 : f32
    %28 = vector.broadcast %cst_11 : f32 to vector<8x1xf32>
    %29 = arith.addf %27, %28 : vector<8x1xf32>
    %30 = math.rsqrt %29 : vector<8x1xf32>
    %31 = vector.broadcast %30 : vector<8x1xf32> to vector<8x128xf32>
    %32 = arith.mulf %16, %31 : vector<8x128xf32>
    %c0_12 = arith.constant 0 : index
    %c0_13 = arith.constant 0 : index
    %33 = vector.load %arg4[%c0_12, %c0_13] : memref<1x128xf32, #tpu.memory_space<vmem>>, vector<1x128xf32>
    %34 = vector.broadcast %33 : vector<1x128xf32> to vector<8x128xf32>
    %35 = arith.mulf %32, %34 : vector<8x128xf32>
    %c0_14 = arith.constant 0 : index
    %c0_15 = arith.constant 0 : index
    %36 = vector.load %arg5[%c0_14, %c0_15] : memref<1x128xf32, #tpu.memory_space<vmem>>, vector<1x128xf32>
    %37 = vector.broadcast %36 : vector<1x128xf32> to vector<8x128xf32>
    %38 = arith.addf %35, %37 : vector<8x128xf32>
    %c0_16 = arith.constant 0 : index
    %c0_17 = arith.constant 0 : index
    %39 = vector.load %arg6[%c0_16, %c0_17] : memref<8x128xf32, #tpu.memory_space<vmem>>, vector<8x128xf32>
    tpu.vector_store %arg6[%c0_16, %c0_17], %38 {strides = array<i32>} : memref<8x128xf32, #tpu.memory_space<vmem>>, vector<8x128xf32>,
    return
  }
  func.func @transform_0(%arg0: i32) -> (i32, i32) {
    %c0_i32 = arith.constant 0 : i32
    %c0_i32_0 = arith.constant 0 : i32
    return %arg0, %c0_i32 : i32, i32
  }
  func.func @transform_1(%arg0: i32) -> (i32, i32) {
    %c0_i32 = arith.constant 0 : i32
    %c0_i32_0 = arith.constant 0 : i32
    %c0_i32_1 = arith.constant 0 : i32
    return %c0_i32, %c0_i32_0 : i32, i32
  }
  func.func @transform_2(%arg0: i32) -> (i32, i32) {
    %c0_i32 = arith.constant 0 : i32
    %c0_i32_0 = arith.constant 0 : i32
    %c0_i32_1 = arith.constant 0 : i32
    return %c0_i32, %c0_i32_0 : i32, i32
  }
  func.func @transform_3(%arg0: i32) -> (i32, i32) {
    %c0_i32 = arith.constant 0 : i32
    %c0_i32_0 = arith.constant 0 : i32
    %c0_i32_1 = arith.constant 0 : i32
    return %c0_i32, %c0_i32_0 : i32, i32
  }
  func.func @transform_4(%arg0: i32) -> (i32, i32) {
    %c0_i32 = arith.constant 0 : i32
    %c0_i32_0 = arith.constant 0 : i32
    %c0_i32_1 = arith.constant 0 : i32
    return %c0_i32, %c0_i32_0 : i32, i32
  }
  func.func @transform_5(%arg0: i32) -> (i32, i32) {
    %c0_i32 = arith.constant 0 : i32
    %c0_i32_0 = arith.constant 0 : i32
    return %arg0, %c0_i32 : i32, i32
  }
}

</mosaic_0001>

<bundles_post_ra>
// kernel: apply.1
= control target key start
LH: loop header
LB: loop body
LE: loop exit
PB: predicated region body
PF: predicated region fallthrough
CT: control target
= control target key end

     0   :  { %10 = vsyncpa [#allocation3], 0  ;;  %s557_s18 = smov 0   ;;  %s638_s0 = inlined_call_operand.vmem [shape: s32[16,1], index: 0, kind: input, shape index: {}]   ;;  %s639_s1 = inlined_call_operand.vmem [shape: bf16[64,128], index: 1, kind: input, shape index: {}]   ;;  %s640_s2 = inlined_call_operand.vmem [shape: f32[8,128], index: 2, kind: input, shape index: {}]   ;;  %s641_s3 = inlined_call_operand.hbm [shape: f32[1,128], index: 3, kind: input, shape index: {}]   ;;  %s642_s4 = inlined_call_operand.vmem [shape: f32[1,128], index: 4, kind: input, shape index: {}]   ;;  %s643_s5 = inlined_call_operand.vmem [shape: f32[16,128], index: 5, kind: output, shape index: {}]  }
   0x1 LB: > { %s563_s19 = sadd.s32 4294967295, %s521_s18   ;;  %p420_p0 = scmp.ge.s32.totalorder %s521_s18, 1  ;;  %s521_s18 = sphi %s557_s18, %s16_s18  }
   0x2   : > { %p157_p1 = scmp.lt.s32.totalorder %s521_s18, 3  ;;  %p644_p3 = scmp.eq.s32.totalorder %s563_s19, 0 }
   0x3   : > { %s523_s21 = smov [#allocation2]   ;;  %s483_s26 = scalar_lea.hbm %s641_s3, 16 }
   0x4   : > { %p567_p2 = pnand %p420_p0, %p157_p1  ;;  %s176_s22 = sshll.u32 %s523_s21, 4  ;;  %s177_s22 = int_to_ptr.vmem [resolvable:$true] %s176_s22 }
   0x5   : > { %p484_p6 = scmp.ne.s32.totalorder %s641_s3, %s483_s26  ;;  %p490_p10 = scmp.lt.u32.totalorder %s483_s26, %s641_s3 }
   0x6   : > { %s646_s20 = scalar_select %p567_p2, 1, 0 }
   0x7   : > { %p458_p4 = pneg %p567_p2 }
   0x9   : > { %p576_p5 = pnand %p644_p3, %p458_p4 }
   0xb   : > { %p485_p7 = pneg %p576_p5 }
   0xd   : > { %p486_p8 = pnand %p485_p7, %p484_p6 }
   0xf   : > { %p487_p9 = pneg %p486_p8 }
  0x11   : > { %p492_p11 = pnand %p490_p10, %p487_p9 }
  0x13   : > { %495 = shalt.err (!%p492_p11)
}
  0x14   : > { %s496_s6 = scalar_lea.vmem %s177_s22, 16  ;;  %s503_s7 = scalar_lea.vmem %s177_s22, 32 }
  0x15   : > { %p497_p12 = scmp.ne.s32.totalorder %s177_s22, %s496_s6  ;;  %p504_p1 = scmp.lt.s32.totalorder %s177_s22, %s177_s22 }
  0x16   : > { %p505_p4 = scmp.lt.s32.totalorder %s503_s7, %s496_s6 }
  0x17   : > { %p499_p13 = pnand %p497_p12, %p485_p7 }
  0x18   : > { %p506_p3 = por %p505_p4, %p504_p1 }
  0x19   : > { %p500_p0 = pneg %p499_p13 }
  0x1b   : > { %p507_p2 = pnand %p506_p3, %p500_p0 }
  0x1d   : > { %510 = shalt.err (!%p507_p2)
}
  0x1e   : > { %461 = dma.hbm_to_vmem [thread:$0]  (!%p576_p5), %s641_s3, 16, %s177_s22, [#allocation3]  }
  0x1f   : > { %p648_p6 = scmp.ne.s32.totalorder %s646_s20, 0 }
  0x20   : > { %p649_p8 = scmp.eq.s32.totalorder (!%p648_p6), %s563_s19, 0 }
  0x21   : > { %199 = sbr.rel (%p648_p6) target bundleno = 709 (0x2c5), region = 40 }
  0x28   : > { %516 = dma.done.wait (%p649_p8), [#allocation3], 16   ;;  %p650_p7 = pmov %p649_p8 }
  0x29   : > { %p225_p9 = scmp.lt.s32.totalorder %s563_s19, 1  ;;  %v524_v0 = vmov 0   ;;  %v525_v1 = vmov 0.0   ;;  %v477_v3 = vld [vmem:[%s639_s1] sm:$0xff]   ;;  %v478_v4 = vld [vmem:[%s639_s1 + $0x8] sm:$0xff]   ;;  %vm526_vm0 = vmmov 0   ;;  %v235_v7 = vlaneseq }
  0x2a   : > { %518 = vsyncadd (%p650_p7), [#allocation3], 4294967280  ;;  %476 = vset.pattern.permute.xlu0 %v524_v0  ;;  %442 = vmatprep.subr.bf16.mxu0 %v525_v1  ;;  %v479_v5 = vld [vmem:[%s639_s1 + $0x10] sm:$0xff]   ;;  %v480_v6 = vld [vmem:[%s639_s1 + $0x18] sm:$0xff]   ;;  %vm277_vm2 = vcmask 523264  }
  0x2b   : > { %s652_s19 = smov (!%p225_p9, %s563_s19), 1  ;;  %443 = vmatpush3.bf16.msra.mxu0 %v477_v3  ;;  %450 = vmatprep.mubr.msk.bf16.mxu0 %vm526_vm0, %v525_v1  ;;  %v236_v8 = vand.u32 127, %v235_v7  ;;  %v252_v12 = vld [vmem:[%s640_s2] sm:$0xff] }
  0x2c   : > { %s425_s10 = sshll.u32 %s652_s19, 3  ;;  %444 = vmatprep.subr.bf16.mxu0 %v525_v1  ;;  %v433_v30 = vld [vmem:[#allocation2] ss:$0 sm:$0xff] }
  0x2d   : > { %s228_s13 = scalar_lea.vmem %s638_s0, %s425_s10  ;;  %v434_v32 = vld [vmem:[%s642_s4] ss:$0 sm:$0xff]  ;;  %s232_s30 = scalar_lea.vmem %s643_s5, %s425_s10 }
  0x2e   : > { %v234_v2 = vld [vmem:[%s228_s13] sm:$0xff] }
  0x2f   : > { %238 = vperm.xlu0 %476, %v234_v2   ;;  %445 = vmatpush3.bf16.msra.mxu0 %v478_v4 }
  0x30   : > { %446 = vmatprep.subr.bf16.mxu0 %v525_v1 }
  0x33   : > { %447 = vmatpush3.bf16.msra.mxu0 %v479_v5 }
  0x34   : > { %448 = vmatprep.subr.bf16.mxu0 %v525_v1 }
  0x37   : > { %449 = vmatpush3.bf16.msra.mxu0 %v480_v6 }
  0xae   : > { %v239_v9 = vpop.permute.xlu0 %238 }
  0xaf   : > { %vm240_vm1 = vcmp.eq.s32.totalorder %v239_v9, %v236_v8 }
  0xb0   : > { %v427_v10 = vsel %vm240_vm1, 1.0, %v525_v1 }
  0xb1   : > { %v243_v11 = vpack.c.bf16 %v427_v10, %v427_v10 }
  0xb3   : > { %451 = vmatmul.mubr.msk.bf16.vlgmr.msra.gmra.mrb[0].mxu0 %vm277_vm2, %v243_v11 }
 0x186   : > { %v315_v13 = vpop.f32.mrb[0].mxu0 }
 0x187   : > { %v316_v14 = vadd.f32 %v315_v13, %v252_v12  ;;  %v452_v15 = vpop.f32.mrb[1].mxu0 }
 0x188   : > { %v318_v16 = vpop.f32.mrb[2].mxu0 }
 0x189   : > { %321 = vadd.xlane.f32.xlu0 %v316_v14  ;;  %v453_v17 = vpop.f32.mrb[3].mxu0 }
 0x216   : > { %v322_v18 = vpop.xlane.xlu0 %321 }
 0x217   : > { %v323_v19 = vmul.f32 0.03125, %v322_v18 }
 0x219   : > { %v324_v20 = vsub.f32 %v316_v14, %v323_v19  ;;  %v328_v22 = vmul.f32 %v323_v19, %v323_v19 }
 0x21b   : > { %v325_v21 = vmul.f32 %v324_v20, %v324_v20  ;;  %v329_v23 = vmul.f32 96.0, %v328_v22 }
 0x21d   : > { %326 = vadd.xlane.f32.xlu1 %v325_v21 }
 0x2aa   : > { %v327_v24 = vpop.xlane.xlu1 %326 }
 0x2ab   : > { %v330_v25 = vsub.f32 %v327_v24, %v329_v23 }
 0x2ad   : > { %v331_v26 = vmul.f32 0.03125, %v330_v25 }
 0x2af   : > { %v332_v27 = vmax.f32 %v331_v26, 0.0 }
 0x2b1   : > { %v333_v28 = vadd.f32 1e-05, %v332_v27 }
 0x2b3   : > { %481 = vrsqrt.f32 %v333_v28 }
 0x2bd   : > { %v482_v29 = vpop.eup %481 }
 0x2be   : > { %v335_v31 = vmul.f32 %v482_v29, %v324_v20 }
 0x2c0   : > { %v343_v33 = vmul.f32 %v433_v30, %v335_v31 }
 0x2c2   : > { %v351_v34 = vadd.f32 %v434_v32, %v343_v33 }
 0x2c4   : > { %352 = vst [vmem:[%s232_s30] sm:$0xff] %v351_v34 }
 0x2c5 PF: > { %s16_s18 = sadd.s32 1, %s521_s18  }
 0x2c6   : > { %p13_p2 = scmp.ge.s32.totalorder %s16_s18, 4  }
 0x2c8   :  { %15 = sbr.rel (!%p13_p2) target bundleno = 1 (0x1), region = 75 }
 0x2cf   :  { %372 = vsyncpa [#allocation3], 1 }
 0x2d0   :  { %374 = vsyncpa [#allocation3 + $0x1], 1 }

</bundles_post_ra>
